<compile_context>
chip_gen: v7x
topology: tpu7x:2x2x1
jax: 0.10.0
libtpu: 0.0.40
codegen_flags: <defaults>
</compile_context>

<pallas_src>
import functools

import jax
import jax.numpy as jnp
from jax.experimental import pallas as pl
from jax.experimental.pallas import tpu as pltpu

_SUBLANE_F32 = 8
_OUT_LANES = 128


def _combined_loss_kernel(labels_ref, s_logits_ref, t_logits_ref,
                          s_hid_ref, t_hid_ref, part_ref,
                          *, inv_temperature, t_int_pow):
    s = s_logits_ref[...].astype(jnp.float32)              # (bt, C)
    t = t_logits_ref[...].astype(jnp.float32)              # (bt, C)
    labels = labels_ref[...]                                # (bt, 1) int32
    bt, C = s.shape
    inv_T = jnp.float32(inv_temperature)

    # ---- student log-sum-exps (plain + temperature-scaled); one exp pass if T is int
    s_max = jnp.max(s, axis=-1, keepdims=True)              # (bt, 1)
    s_shift = s - s_max                                      # (bt, C)
    st_shift = s_shift * inv_T                               # (bt, C)
    e_st = jnp.exp(st_shift)                                 # (bt, C)
    if t_int_pow is not None:
        e_s = e_st                                           # exp(s_shift) == e_st ** T
        for _ in range(t_int_pow - 1):
            e_s = e_s * e_st
    else:
        e_s = jnp.exp(s_shift)
    s_lse = jnp.log(jnp.sum(e_s, axis=-1, keepdims=True))    # (bt, 1)
    st_lse = jnp.log(jnp.sum(e_st, axis=-1, keepdims=True))  # (bt, 1)

    # ---- cross-entropy: lse - picked logit (masked pick, no one-hot materialization)
    col_ids = jax.lax.broadcasted_iota(jnp.int32, (bt, C), 1)
    picked = jnp.sum(jnp.where(col_ids == labels, s_shift, jnp.float32(0.0)),
                     axis=-1, keepdims=True)                 # (bt, 1)
    ce_part = jnp.sum(s_lse - picked)                        # scalar: sum_b -log q[label]

    # ---- logit distillation: KL(p_T || q_T), batch-sum (fused, no prob temporaries)
    t_max = jnp.max(t, axis=-1, keepdims=True)               # (bt, 1)
    tt_shift = (t - t_max) * inv_T                           # (bt, C)
    tt_exp = jnp.exp(tt_shift)                               # (bt, C)
    tt_sum = jnp.sum(tt_exp, axis=-1, keepdims=True)         # (bt, 1)
    tt_lse = jnp.log(tt_sum)                                 # (bt, 1)
    inv_tt_sum = pl.reciprocal(tt_sum, approx=False)         # exact, (bt,1)-sized EUP work
    cross = jnp.sum(tt_exp * (tt_shift - st_shift), axis=-1, keepdims=True)
    kl_part = jnp.sum(cross * inv_tt_sum + (st_lse - tt_lse))  # scalar

    # ---- representation loss via the cosine identity (no (bt, H) f32 temporaries)
    sh = s_hid_ref[...].astype(jnp.float32)                  # (bt, H)
    th = t_hid_ref[...].astype(jnp.float32)                  # (bt, H)
    eps2 = jnp.float32(1e-24)                                # (F.normalize eps = 1e-12)^2
    ss = jnp.sum(sh * sh, axis=-1, keepdims=True)            # (bt, 1)
    tt2 = jnp.sum(th * th, axis=-1, keepdims=True)           # (bt, 1)
    st = jnp.sum(sh * th, axis=-1, keepdims=True)            # (bt, 1)
    inv_sn = jax.lax.rsqrt(jnp.maximum(ss, eps2))
    inv_tn = jax.lax.rsqrt(jnp.maximum(tt2, eps2))
    rep_part = jnp.sum(ss * (inv_sn * inv_sn) + tt2 * (inv_tn * inv_tn)
                       - 2.0 * st * (inv_sn * inv_tn))        # scalar

    # ---- lane-dense per-step partials: lanes [0,1,2] = (ce, kl, rep), rest zero
    lane = jax.lax.broadcasted_iota(jnp.int32, part_ref.shape, 2)
    part_ref[...] = jnp.where(lane == 0, ce_part,
                     jnp.where(lane == 1, kl_part,
                      jnp.where(lane == 2, rep_part, jnp.float32(0.0))))


def _tpu_vmem_capacity_bytes():
    try:
        info = pltpu.get_tpu_info()
        return int(getattr(info, "vmem_capacity_bytes", 64 * 1024 * 1024))
    except Exception:
        return 64 * 1024 * 1024            # conservative fallback (v7x-sized VMEM)


def _vmem_budget():
    phys = _tpu_vmem_capacity_bytes()
    if phys <= 64 * 1024 * 1024:           # v7x: 64 MiB VMEM per TensorCore
        return 48 * 1024 * 1024
    return 96 * 1024 * 1024                # v5e / v6e: 128 MiB physical VMEM


def _pick_b_tile(batch, num_classes, hidden, logit_isize, hid_isize,
                 vmem_limit, requested=None):
    """Batch tile: multiple of the packed-sublane count (or the full batch), divides
    the batch, and keeps (double-buffered raw inputs + in-kernel f32 temporaries)
    comfortably inside the scoped-VMEM limit."""
    sub = max(8, 32 // min(logit_isize, hid_isize))   # 8 f32, 16 bf16, 32 int8/fp8
    if requested is not None:
        bt = int(requested)
        assert batch % bt == 0, "b_tile must divide the batch size"
        assert bt == batch or bt % sub == 0, f"b_tile must be a multiple of {sub} (or == batch)"
        return bt
    if batch % sub != 0:
        return batch                        # single full-batch tile is always a valid block
    raw_row = 2 * num_classes * logit_isize + 2 * hidden * hid_isize + 4
    f32_row = (8 * num_classes + 3 * hidden) * 4      # live f32 temporaries in the body
    per_row = 2 * raw_row + f32_row                   # 2x: double-buffered pipeline inputs
    budget = (2 * vmem_limit) // 3                    # headroom for compiler scratch
    bt = min(batch, max(sub, budget // max(per_row, 1)))
    bt = max(sub, (bt // sub) * sub)
    while batch % bt != 0:
        bt -= sub
    return bt


def combined_repr_loss(labels, student_logits, teacher_logits,
                       student_hidden, teacher_hidden,
                       *, alpha=0.3, beta=0.3, temperature=2.0, b_tile=None):
    """JAX wrapper mirroring CombinedReprLoss.forward.

    Caller contract: pass logits / hidden states in their producer dtype (bf16
    preferred) -- the kernel up-casts in VMEM, so pre-casting to f32 only doubles
    the HBM traffic on memory-bound v5e / v6e.
    """
    assert 0.0 <= alpha <= 1.0 and 0.0 <= beta <= 1.0
    B, C = student_logits.shape
    H = student_hidden.shape[-1]

    # glue: squeeze teacher hidden (B, 1, H) -> (B, H); labels -> (B, 1) int32
    t_hid = jnp.squeeze(teacher_hidden, axis=1)
    labels_2d = labels.astype(jnp.int32).reshape(B, 1)

    logit_isize = jnp.dtype(student_logits.dtype).itemsize
    hid_isize = jnp.dtype(student_hidden.dtype).itemsize
    vmem_limit = _vmem_budget()
    bt = _pick_b_tile(B, C, H, logit_isize, hid_isize, vmem_limit, requested=b_tile)
    steps = B // bt

    T = float(temperature)
    t_int_pow = int(T) if (T.is_integer() and 1.0 <= T <= 4.0) else None

    kernel = functools.partial(_combined_loss_kernel,
                               inv_temperature=1.0 / T, t_int_pow=t_int_pow)

    n_exp = 2 if t_int_pow is not None else 3
    cost = pl.CostEstimate(
        flops=18 * B * C + 8 * B * H,
        transcendentals=n_exp * B * C + 6 * B,
        bytes_accessed=int(2 * B * C * logit_isize + 2 * B * H * hid_isize
                           + 4 * B + steps * _SUBLANE_F32 * _OUT_LANES * 4))

    partials = pl.pallas_call(
        kernel,
        out_shape=jax.ShapeDtypeStruct((steps, _SUBLANE_F32, _OUT_LANES), jnp.float32),
        grid=(steps,),
        in_specs=[
            pl.BlockSpec((bt, 1), lambda i: (i, 0)),   # labels          (B, 1) int32
            pl.BlockSpec((bt, C), lambda i: (i, 0)),   # student_logits  (B, C)
            pl.BlockSpec((bt, C), lambda i: (i, 0)),   # teacher_logits  (B, C)
            pl.BlockSpec((bt, H), lambda i: (i, 0)),   # student_hidden  (B, H)
            pl.BlockSpec((bt, H), lambda i: (i, 0)),   # teacher_hidden  (B, H)
        ],
        out_specs=pl.BlockSpec((1, _SUBLANE_F32, _OUT_LANES), lambda i: (i, 0, 0)),
        compiler_params=pltpu.CompilerParams(
            dimension_semantics=("parallel",),          # no carried state -> megacore split
            vmem_limit_bytes=vmem_limit),
        cost_estimate=cost,
    )(labels_2d, student_logits, teacher_logits, student_hidden, t_hid)

    # Reduce the per-step raw partial sums, then apply the loss weights exactly once.
    ce_sum = jnp.sum(partials[:, 0, 0])
    kl_sum = jnp.sum(partials[:, 0, 1])
    rep_sum = jnp.sum(partials[:, 0, 2])
    w_ce = (1.0 - alpha - beta) / B
    w_kl = beta * T * T / B
    w_rep = alpha / (B * H)
    return w_ce * ce_sum + w_kl * kl_sum + w_rep * rep_sum


def _reference(labels, s_logits, t_logits, s_hid, t_hid, alpha, beta, T):
    # plain-JAX reference of the PyTorch semantics (for a correctness check)
    s_logits = s_logits.astype(jnp.float32)
    t_logits = t_logits.astype(jnp.float32)
    log_sm = jax.nn.log_softmax(s_logits, axis=-1)
    ce = -jnp.mean(jnp.take_along_axis(log_sm, labels[:, None], axis=1))
    tp = jax.nn.softmax(t_logits / T, axis=-1)
    sp = jax.nn.log_softmax(s_logits / T, axis=-1)
    kl = jnp.sum(tp * (jnp.log(tp) - sp)) / s_logits.shape[0] * T * T
    th = jnp.squeeze(t_hid, axis=1).astype(jnp.float32)
    sh = s_hid.astype(jnp.float32)
    thn = th / jnp.maximum(jnp.linalg.norm(th, axis=1, keepdims=True), 1e-12)
    shn = sh / jnp.maximum(jnp.linalg.norm(sh, axis=1, keepdims=True), 1e-12)
    rep = jnp.mean((shn - thn) ** 2)
    return alpha * rep + beta * kl + (1 - alpha - beta) * ce


if __name__ == "__main__":
    B, C, H = 16, 128, 64
    alpha, beta, temperature = 0.3, 0.3, 2.0

    key = jax.random.PRNGKey(0)
    k1, k2, k3, k4, k5 = jax.random.split(key, 5)
    labels = jax.random.randint(k1, (B,), 0, C, dtype=jnp.int32)
    student_logits = jax.random.normal(k2, (B, C), dtype=jnp.float32)
    teacher_logits = jax.random.normal(k3, (B, C), dtype=jnp.float32)
    student_hidden = jax.random.normal(k4, (B, H), dtype=jnp.float32)
    teacher_hidden = jax.random.normal(k5, (B, 1, H), dtype=jnp.float32)

    ref = _reference(labels, student_logits, teacher_logits,
                     student_hidden, teacher_hidden, alpha, beta, temperature)

    # f32 inputs, b_tile=8 -> 2 grid steps, exercising the per-step partial ("parallel") path.
    loss = combined_repr_loss(labels, student_logits, teacher_logits,
                              student_hidden, teacher_hidden,
                              alpha=alpha, beta=beta, temperature=temperature,
                              b_tile=8)
    loss = jax.block_until_ready(loss)
    assert jnp.allclose(loss, ref, rtol=1e-5, atol=1e-5), (loss, ref)

    # bf16 producer path (preferred on v5e/v6e: halves HBM bytes; kernel up-casts in VMEM).
    loss_bf16 = combined_repr_loss(
        labels,
        student_logits.astype(jnp.bfloat16), teacher_logits.astype(jnp.bfloat16),
        student_hidden.astype(jnp.bfloat16), teacher_hidden.astype(jnp.bfloat16),
        alpha=alpha, beta=beta, temperature=temperature)
    loss_bf16 = jax.block_until_ready(loss_bf16)
    assert jnp.allclose(loss_bf16, ref, rtol=5e-2, atol=5e-2), (loss_bf16, ref)

    print("KERNEL_OK")
</pallas_src>

<mosaic_0001>
module attributes {stable_mosaic.version = 11 : i64} {
  func.func @_combined_loss_kernel(%arg0: i32, %arg1: memref<8x1xi32, #tpu.memory_space<vmem>>, %arg2: memref<8x128xf32, #tpu.memory_space<vmem>>, %arg3: memref<8x128xf32, #tpu.memory_space<vmem>>, %arg4: memref<8x64xf32, #tpu.memory_space<vmem>>, %arg5: memref<8x64xf32, #tpu.memory_space<vmem>>, %arg6: memref<1x8x128xf32, #tpu.memory_space<vmem>>) attributes {dimension_semantics = [#tpu.dimension_semantics<parallel>], iteration_bounds = array<i64: 2>, scalar_prefetch = 0 : i64, scratch_operands = 0 : i64, tpu.core_type = #tpu.core_type<tc>, window_params = [{transform_indices = @transform_0, window_bounds = array<i64: 8, 1>}, {transform_indices = @transform_1, window_bounds = array<i64: 8, 128>}, {transform_indices = @transform_2, window_bounds = array<i64: 8, 128>}, {transform_indices = @transform_3, window_bounds = array<i64: 8, 64>}, {transform_indices = @transform_4, window_bounds = array<i64: 8, 64>}, {transform_indices = @transform_5, window_bounds = array<i64: 1, 8, 128>}]} {
    %c0 = arith.constant 0 : index
    %c0_0 = arith.constant 0 : index
    %0 = vector.load %arg2[%c0, %c0_0] : memref<8x128xf32, #tpu.memory_space<vmem>>, vector<8x128xf32>
    %c0_1 = arith.constant 0 : index
    %c0_2 = arith.constant 0 : index
    %1 = vector.load %arg3[%c0_1, %c0_2] : memref<8x128xf32, #tpu.memory_space<vmem>>, vector<8x128xf32>
    %c0_3 = arith.constant 0 : index
    %c0_4 = arith.constant 0 : index
    %2 = vector.load %arg1[%c0_3, %c0_4] : memref<8x1xi32, #tpu.memory_space<vmem>>, vector<8x1xi32>
    %cst = arith.constant dense<0xFF800000> : vector<8xf32>
    %3 = vector.multi_reduction <maximumf>, %0, %cst [1] : vector<8x128xf32> to vector<8xf32>
    %4 = vector.shape_cast %3 : vector<8xf32> to vector<8x1xf32>
    %5 = vector.broadcast %4 : vector<8x1xf32> to vector<8x128xf32>
    %6 = arith.subf %0, %5 : vector<8x128xf32>
    %cst_5 = arith.constant 5.000000e-01 : f32
    %7 = vector.broadcast %cst_5 : f32 to vector<8x128xf32>
    %8 = arith.mulf %6, %7 : vector<8x128xf32>
    %9 = math.exp %8 : vector<8x128xf32>
    %10 = arith.mulf %9, %9 : vector<8x128xf32>
    %cst_6 = arith.constant dense<0.000000e+00> : vector<8xf32>
    %11 = vector.multi_reduction <add>, %10, %cst_6 [1] : vector<8x128xf32> to vector<8xf32>
    %12 = vector.shape_cast %11 : vector<8xf32> to vector<8x1xf32>
    %13 = math.log %12 : vector<8x1xf32>
    %cst_7 = arith.constant dense<0.000000e+00> : vector<8xf32>
    %14 = vector.multi_reduction <add>, %9, %cst_7 [1] : vector<8x128xf32> to vector<8xf32>
    %15 = vector.shape_cast %14 : vector<8xf32> to vector<8x1xf32>
    %16 = math.log %15 : vector<8x1xf32>
    %17 = tpu.iota {dimensions = array<i32: 1>} : vector<8x128xi32>
    %18 = vector.broadcast %2 : vector<8x1xi32> to vector<8x128xi32>
    %19 = arith.cmpi eq, %17, %18 : vector<8x128xi32>
    %cst_8 = arith.constant 0.000000e+00 : f32
    %20 = vector.broadcast %cst_8 : f32 to vector<8x128xf32>
    %21 = arith.select %19, %6, %20 : vector<8x128xi1>, vector<8x128xf32>
    %cst_9 = arith.constant dense<0.000000e+00> : vector<8xf32>
    %22 = vector.multi_reduction <add>, %21, %cst_9 [1] : vector<8x128xf32> to vector<8xf32>
    %23 = vector.shape_cast %22 : vector<8xf32> to vector<8x1xf32>
    %24 = arith.subf %13, %23 : vector<8x1xf32>
    %25 = vector.shape_cast %24 : vector<8x1xf32> to vector<1x8x1xf32>
    %cst_10 = arith.constant dense<0.000000e+00> : vector<1xf32>
    %26 = vector.multi_reduction <add>, %25, %cst_10 [1, 2] : vector<1x8x1xf32> to vector<1xf32>
    %27 = vector.shape_cast %26 : vector<1xf32> to vector<1x1x1xf32>
    %28 = vector.extract %27[0, 0, 0] : f32 from vector<1x1x1xf32>
    %cst_11 = arith.constant dense<0xFF800000> : vector<8xf32>
    %29 = vector.multi_reduction <maximumf>, %1, %cst_11 [1] : vector<8x128xf32> to vector<8xf32>
    %30 = vector.shape_cast %29 : vector<8xf32> to vector<8x1xf32>
    %31 = vector.broadcast %30 : vector<8x1xf32> to vector<8x128xf32>
    %32 = arith.subf %1, %31 : vector<8x128xf32>
    %cst_12 = arith.constant 5.000000e-01 : f32
    %33 = vector.broadcast %cst_12 : f32 to vector<8x128xf32>
    %34 = arith.mulf %32, %33 : vector<8x128xf32>
    %35 = math.exp %34 : vector<8x128xf32>
    %cst_13 = arith.constant dense<0.000000e+00> : vector<8xf32>
    %36 = vector.multi_reduction <add>, %35, %cst_13 [1] : vector<8x128xf32> to vector<8xf32>
    %37 = vector.shape_cast %36 : vector<8xf32> to vector<8x1xf32>
    %38 = math.log %37 : vector<8x1xf32>
    %39 = tpu.reciprocal %37 : vector<8x1xf32> -> vector<8x1xf32>
    %40 = arith.subf %34, %8 : vector<8x128xf32>
    %41 = arith.mulf %35, %40 : vector<8x128xf32>
    %cst_14 = arith.constant dense<0.000000e+00> : vector<8xf32>
    %42 = vector.multi_reduction <add>, %41, %cst_14 [1] : vector<8x128xf32> to vector<8xf32>
    %43 = vector.shape_cast %42 : vector<8xf32> to vector<8x1xf32>
    %44 = arith.mulf %43, %39 : vector<8x1xf32>
    %45 = arith.subf %16, %38 : vector<8x1xf32>
    %46 = arith.addf %44, %45 : vector<8x1xf32>
    %47 = vector.shape_cast %46 : vector<8x1xf32> to vector<1x8x1xf32>
    %cst_15 = arith.constant dense<0.000000e+00> : vector<1xf32>
    %48 = vector.multi_reduction <add>, %47, %cst_15 [1, 2] : vector<1x8x1xf32> to vector<1xf32>
    %49 = vector.shape_cast %48 : vector<1xf32> to vector<1x1x1xf32>
    %50 = vector.extract %49[0, 0, 0] : f32 from vector<1x1x1xf32>
    %c0_16 = arith.constant 0 : index
    %c0_17 = arith.constant 0 : index
    %51 = vector.load %arg4[%c0_16, %c0_17] : memref<8x64xf32, #tpu.memory_space<vmem>>, vector<8x64xf32>
    %c0_18 = arith.constant 0 : index
    %c0_19 = arith.constant 0 : index
    %52 = vector.load %arg5[%c0_18, %c0_19] : memref<8x64xf32, #tpu.memory_space<vmem>>, vector<8x64xf32>
    %53 = arith.mulf %51, %51 : vector<8x64xf32>
    %cst_20 = arith.constant dense<0.000000e+00> : vector<8xf32>
    %54 = vector.multi_reduction <add>, %53, %cst_20 [1] : vector<8x64xf32> to vector<8xf32>
    %55 = vector.shape_cast %54 : vector<8xf32> to vector<8x1xf32>
    %56 = arith.mulf %52, %52 : vector<8x64xf32>
    %cst_21 = arith.constant dense<0.000000e+00> : vector<8xf32>
    %57 = vector.multi_reduction <add>, %56, %cst_21 [1] : vector<8x64xf32> to vector<8xf32>
    %58 = vector.shape_cast %57 : vector<8xf32> to vector<8x1xf32>
    %59 = arith.mulf %51, %52 : vector<8x64xf32>
    %cst_22 = arith.constant dense<0.000000e+00> : vector<8xf32>
    %60 = vector.multi_reduction <add>, %59, %cst_22 [1] : vector<8x64xf32> to vector<8xf32>
    %61 = vector.shape_cast %60 : vector<8xf32> to vector<8x1xf32>
    %cst_23 = arith.constant 1.000000e-24 : f32
    %62 = vector.broadcast %cst_23 : f32 to vector<8x1xf32>
    %63 = arith.maximumf %55, %62 : vector<8x1xf32>
    %64 = math.rsqrt %63 : vector<8x1xf32>
    %cst_24 = arith.constant 1.000000e-24 : f32
    %65 = vector.broadcast %cst_24 : f32 to vector<8x1xf32>
    %66 = arith.maximumf %58, %65 : vector<8x1xf32>
    %67 = math.rsqrt %66 : vector<8x1xf32>
    %68 = arith.mulf %64, %64 : vector<8x1xf32>
    %69 = arith.mulf %55, %68 : vector<8x1xf32>
    %70 = arith.mulf %67, %67 : vector<8x1xf32>
    %71 = arith.mulf %58, %70 : vector<8x1xf32>
    %72 = arith.addf %69, %71 : vector<8x1xf32>
    %cst_25 = arith.constant 2.000000e+00 : f32
    %73 = vector.broadcast %cst_25 : f32 to vector<8x1xf32>
    %74 = arith.mulf %73, %61 : vector<8x1xf32>
    %75 = arith.mulf %64, %67 : vector<8x1xf32>
    %76 = arith.mulf %74, %75 : vector<8x1xf32>
    %77 = arith.subf %72, %76 : vector<8x1xf32>
    %78 = vector.shape_cast %77 : vector<8x1xf32> to vector<1x8x1xf32>
    %cst_26 = arith.constant dense<0.000000e+00> : vector<1xf32>
    %79 = vector.multi_reduction <add>, %78, %cst_26 [1, 2] : vector<1x8x1xf32> to vector<1xf32>
    %80 = vector.shape_cast %79 : vector<1xf32> to vector<1x1x1xf32>
    %81 = vector.extract %80[0, 0, 0] : f32 from vector<1x1x1xf32>
    %82 = tpu.iota {dimensions = array<i32: 2>} : vector<1x8x128xi32>
    %c0_i32 = arith.constant 0 : i32
    %83 = vector.broadcast %c0_i32 : i32 to vector<1x8x128xi32>
    %84 = arith.cmpi eq, %82, %83 : vector<1x8x128xi32>
    %c1_i32 = arith.constant 1 : i32
    %85 = vector.broadcast %c1_i32 : i32 to vector<1x8x128xi32>
    %86 = arith.cmpi eq, %82, %85 : vector<1x8x128xi32>
    %c2_i32 = arith.constant 2 : i32
    %87 = vector.broadcast %c2_i32 : i32 to vector<1x8x128xi32>
    %88 = arith.cmpi eq, %82, %87 : vector<1x8x128xi32>
    %cst_27 = arith.constant 0.000000e+00 : f32
    %89 = vector.broadcast %81 : f32 to vector<1x8x128xf32>
    %90 = vector.broadcast %cst_27 : f32 to vector<1x8x128xf32>
    %91 = arith.select %88, %89, %90 : vector<1x8x128xi1>, vector<1x8x128xf32>
    %92 = vector.broadcast %50 : f32 to vector<1x8x128xf32>
    %93 = arith.select %86, %92, %91 : vector<1x8x128xi1>, vector<1x8x128xf32>
    %94 = vector.broadcast %28 : f32 to vector<1x8x128xf32>
    %95 = arith.select %84, %94, %93 : vector<1x8x128xi1>, vector<1x8x128xf32>
    %c0_28 = arith.constant 0 : index
    %c0_29 = arith.constant 0 : index
    %c0_30 = arith.constant 0 : index
    %96 = vector.load %arg6[%c0_28, %c0_29, %c0_30] : memref<1x8x128xf32, #tpu.memory_space<vmem>>, vector<1x8x128xf32>
    tpu.vector_store %arg6[%c0_28, %c0_29, %c0_30], %95 {strides = array<i32>} : memref<1x8x128xf32, #tpu.memory_space<vmem>>, vector<1x8x128xf32>,
    return
  }
  func.func @transform_0(%arg0: i32) -> (i32, i32) {
    %c0_i32 = arith.constant 0 : i32
    %c0_i32_0 = arith.constant 0 : i32
    return %arg0, %c0_i32 : i32, i32
  }
  func.func @transform_1(%arg0: i32) -> (i32, i32) {
    %c0_i32 = arith.constant 0 : i32
    %c0_i32_0 = arith.constant 0 : i32
    return %arg0, %c0_i32 : i32, i32
  }
  func.func @transform_2(%arg0: i32) -> (i32, i32) {
    %c0_i32 = arith.constant 0 : i32
    %c0_i32_0 = arith.constant 0 : i32
    return %arg0, %c0_i32 : i32, i32
  }
  func.func @transform_3(%arg0: i32) -> (i32, i32) {
    %c0_i32 = arith.constant 0 : i32
    %c0_i32_0 = arith.constant 0 : i32
    return %arg0, %c0_i32 : i32, i32
  }
  func.func @transform_4(%arg0: i32) -> (i32, i32) {
    %c0_i32 = arith.constant 0 : i32
    %c0_i32_0 = arith.constant 0 : i32
    return %arg0, %c0_i32 : i32, i32
  }
  func.func @transform_5(%arg0: i32) -> (i32, i32, i32) {
    %c0_i32 = arith.constant 0 : i32
    %c0_i32_0 = arith.constant 0 : i32
    %c0_i32_1 = arith.constant 0 : i32
    return %arg0, %c0_i32, %c0_i32_0 : i32, i32, i32
  }
}

</mosaic_0001>

<bundles_post_ra>
// kernel: tpu_custom_call.1
= control target key start
LH: loop header
LB: loop body
LE: loop exit
PB: predicated region body
PF: predicated region fallthrough
CT: control target
= control target key end

     0   :  { %10 = vsyncpa [#allocation3], 0  ;;  %s1077_s0 = inlined_call_operand.vmem [shape: s32[16,1], index: 0, kind: input, shape index: {}]   ;;  %s1078_s1 = inlined_call_operand.vmem [shape: f32[16,128], index: 1, kind: input, shape index: {}]   ;;  %s1079_s2 = inlined_call_operand.hbm [shape: f32[16,128], index: 2, kind: input, shape index: {}]   ;;  %s1080_s3 = inlined_call_operand.hbm [shape: f32[16,64], index: 3, kind: input, shape index: {}]   ;;  %s1081_s4 = inlined_call_operand.vmem [shape: f32[16,64], index: 4, kind: input, shape index: {}]   ;;  %s1082_s5 = inlined_call_operand.hbm [shape: f32[2,8,128], index: 5, kind: output, shape index: {}]  }
   0x1   :  { %12 = vsyncpa [#allocation3 + $0x1], 0 }
   0x2   :  { %13 = vsyncpa [#allocation6], 0 }
   0x3   :  { %15 = vsyncpa [#allocation6 + $0x1], 0 }
   0x4   :  { %16 = vsyncpa [#allocation4], 0 }
   0x5   :  { %18 = vsyncpa [#allocation4 + $0x1], 0  ;;  %s846_s18 = smov 0   ;;  %s848_s19 = smov 0  }
   0x6   :  { %s850_s20 = smov 0   ;;  %s852_s21 = smov 0  }
   0x7 LB: > { %s867_s22 = sadd.s32 4294967295, %s810_s21   ;;  %s586_s23 = sadd.s32 4294967294, %s810_s21   ;;  %s810_s21 = sphi %s852_s21, %s1101_s21   ;;  %s806_s20 = sphi %s850_s20, %s1100_s20   ;;  %s802_s19 = sphi %s848_s19, %s1099_s19   ;;  %s798_s18 = sphi %s846_s18, %s1098_s18  }
   0x8   : > { %s871_s24 = sadd.s32 1, %s810_s21   ;;  %s83_s25 = sadd.s32 1, %s806_s20 }
   0x9   : > { %s80_s26 = ssub.s32 %s810_s21, %s871_s24  ;;  %p90_p0 = scmp.ne.s32.totalorder %s806_s20, %s802_s19 }
   0xa   : > { %p81_p1 = scmp.eq.s32.totalorder %s80_s26, 0  ;;  %p91_p2 = scmp.eq.s32.totalorder %s810_s21, 0 }
   0xb   : > { %p96_p3 = scmp.ne.s32.totalorder %s802_s19, %s798_s18  ;;  %p97_p4 = scmp.eq.s32.totalorder %s867_s22, 0 }
   0xc   : > { %s883_s27 = scalar_select %p81_p1, %s806_s20, %s83_s25  }
   0xd   : > { %p885_p5 = por %p91_p2, %p90_p0  ;;  %p889_p6 = por %p97_p4, %p96_p3 }
   0xe   : > { %p172_p7 = scmp.eq.s32.totalorder %s867_s22, 1  ;;  %p178_p8 = scmp.eq.s32.totalorder %s586_s23, 1 }
   0xf   : > { %s1086_s29 = scalar_select %p889_p6, 1, 0 }
  0x10   : > { %p627_p10 = scmp.lt.s32.totalorder %s810_s21, 2  ;;  %p896_p11 = por %p172_p7, %p90_p0 }
  0x11   : > { %p900_p12 = por %p178_p8, %p96_p3  ;;  %s905_s7 = sand.u32 1, %s806_s20  }
  0x12   : > { %s1087_s30 = scalar_select %p896_p11, 1, 0 }
  0x13   : > { %s1088_s6 = scalar_select %p900_p12, 1, 0 }
  0x14   : > { %s590_s8 = sshll.u32 %s810_s21, 7  ;;  %s589_s9 = sshll.u32 %s905_s7, 3 }
  0x15   : > { %s914_s12 = scalar_lea.hbm %s1079_s2, %s590_s8  ;;  %s216_s13 = scalar_lea.vmem [#allocation2], %s589_s9 }
  0x16   : > { %s223_s14 = sshll.u32 %s216_s13, 4  ;;  %p920_p13 = pnand %p627_p10, %p885_p5  ;;  %s924_s14 = int_to_ptr.vmem [resolvable:$true] %s223_s14 }
  0x17   : > { %s213_s16 = scalar_lea.sflag [#allocation3], %s905_s7  ;;  %s680_s17 = scalar_lea.hbm %s914_s12, 128 }
  0x18   : > { %p681_p2 = scmp.ne.s32.totalorder %s914_s12, %s680_s17  ;;  %p682_p3 = pneg %p920_p13 }
  0x19   : > { %s685_s26 = scalar_lea.hbm %s1079_s2, 256  ;;  %p686_p5 = scmp.lt.u32.totalorder %s914_s12, %s1079_s2 }
  0x1a   : > { %p683_p4 = pnand %p682_p3, %p681_p2  ;;  %p687_p8 = scmp.lt.u32.totalorder %s685_s26, %s680_s17 }
  0x1b   : > { %p689_p9 = scmp.lt.u32.totalorder %s680_s17, %s914_s12 }
  0x1c   : > { %p684_p7 = pneg %p683_p4  ;;  %p688_p10 = por %p687_p8, %p686_p5 }
  0x1e   : > { %p690_p0 = por %p689_p9, %p688_p10 }
  0x20   : > { %p691_p1 = pnand %p690_p0, %p684_p7 }
  0x22   : > { %694 = shalt.err (!%p691_p1)
}
  0x23   : > { %s695_s11 = scalar_lea.vmem %s924_s14, 128  ;;  %s812_s13 = smov [#allocation2]  }
  0x24   : > { %p696_p2 = scmp.ne.s32.totalorder %s924_s14, %s695_s11  ;;  %s700_s23 = sshll.u32 %s812_s13, 4  ;;  %s701_s23 = int_to_ptr.vmem [resolvable:$false] %s700_s23 }
  0x25   : > { %s702_s25 = scalar_lea.vmem %s701_s23, 256  ;;  %p703_p11 = scmp.lt.s32.totalorder %s924_s14, %s701_s23 }
  0x26   : > { %p698_p4 = pnand %p696_p2, %p682_p3  ;;  %p704_p5 = scmp.lt.s32.totalorder %s702_s25, %s695_s11 }
  0x28   : > { %p699_p12 = pneg %p698_p4  ;;  %p705_p8 = por %p704_p5, %p703_p11 }
  0x2a   : > { %p706_p9 = pnand %p705_p8, %p699_p12 }
  0x2c   : > { %709 = shalt.err (!%p706_p9)
}
  0x2d   : > { %619 = dma.hbm_to_vmem [thread:$0]  (!%p920_p13), %s914_s12, 128, %s924_s14, %s213_s16  }
  0x2e   : > { %p1090_p0 = scmp.lt.s32.totalorder %s810_s21, 3  ;;  %p1091_p1 = scmp.ge.s32.totalorder %s810_s21, 1 }
  0x2f   : > { %s967_s10 = scalar_lea.hbm %s1080_s3, %s590_s8  ;;  %s234_s11 = scalar_lea.vmem [#allocation5], %s589_s9 }
  0x30   : > { %p958_p7 = pnand %p1091_p1, %p1090_p0  ;;  %s241_s13 = sshll.u32 %s234_s11, 4  ;;  %s242_s13 = int_to_ptr.vmem [resolvable:$true] %s241_s13 }
  0x31   : > { %s231_s12 = scalar_lea.sflag [#allocation6], %s905_s7  ;;  %s710_s14 = scalar_lea.hbm %s967_s10, 128 }
  0x32   : > { %s1092_s17 = scalar_select %p958_p7, 1, 0 }
  0x33   : > { %p711_p11 = scmp.ne.s32.totalorder %s967_s10, %s710_s14  ;;  %s715_s8 = scalar_lea.hbm %s1080_s3, 256 }
  0x34   : > { %p716_p2 = scmp.lt.u32.totalorder %s967_s10, %s1080_s3  ;;  %p717_p4 = scmp.lt.u32.totalorder %s715_s8, %s710_s14 }
  0x35   : > { %p713_p12 = pnand %p711_p11, %p682_p3  ;;  %p719_p8 = scmp.lt.u32.totalorder %s710_s14, %s967_s10 }
  0x36   : > { %p718_p5 = por %p717_p4, %p716_p2 }
  0x37   : > { %p714_p10 = pneg %p713_p12 }
  0x38   : > { %p720_p9 = por %p719_p8, %p718_p5 }
  0x3a   : > { %p721_p0 = pnand %p720_p9, %p714_p10 }
  0x3c   : > { %724 = shalt.err (!%p721_p0)
}
  0x3d   : > { %s725_s7 = scalar_lea.vmem %s242_s13, 128  ;;  %s813_s9 = smov [#allocation5]  }
  0x3e   : > { %p726_p1 = scmp.ne.s32.totalorder %s242_s13, %s725_s7  ;;  %s730_s28 = sshll.u32 %s813_s9, 4  ;;  %s731_s28 = int_to_ptr.vmem [resolvable:$false] %s730_s28 }
  0x3f   : > { %s732_s11 = scalar_lea.vmem %s731_s28, 256  ;;  %p733_p6 = scmp.lt.s32.totalorder %s242_s13, %s731_s28 }
  0x40   : > { %p728_p11 = pnand %p726_p1, %p682_p3  ;;  %p734_p7 = scmp.lt.s32.totalorder %s732_s11, %s725_s7 }
  0x42   : > { %p729_p12 = pneg %p728_p11  ;;  %p735_p2 = por %p734_p7, %p733_p6 }
  0x44   : > { %p736_p4 = pnand %p735_p2, %p729_p12 }
  0x46   : > { %739 = shalt.err (!%p736_p4)
}
  0x47   : > { %622 = dma.hbm_to_vmem [thread:$0]  (!%p920_p13), %s967_s10, 128, %s242_s13, %s231_s12  }
  0x48   : > { %p1093_p10 = scmp.ne.s32.totalorder %s1092_s17, 0 }
  0x49   : > { %s994_s14 = sand.u32 (!%p1093_p10), 1, %s802_s19   ;;  %p1094_p6 = scmp.ne.s32.totalorder (!%p1093_p10), %s1086_s29, 0 }
  0x4a   : > { %257 = sbr.rel (%p1093_p10) target bundleno = 643 (0x283), region = 40  ;;  %s997_s16 = sshll.u32 (!%p1093_p10), %s994_s14, 3 }
  0x4b   : > { %s260_s23 = scalar_lea.sflag (!%p1093_p10), [#allocation3], %s994_s14  ;;  %s263_s8 = scalar_lea.vmem (!%p1093_p10), [#allocation2], %s997_s16 }
  0x51   : > { %785 = dma.done.wait (%p1094_p6), %s260_s23, 128  }
  0x52   : > { %787 = vsyncadd (%p1094_p6), %s260_s23, 4294967168  ;;  %s269_s15 = scalar_lea.sflag [#allocation6], %s994_s14  ;;  %s272_s17 = scalar_lea.vmem [#allocation5], %s997_s16 }
  0x53   : > { %789 = dma.done.wait (%p1094_p6), %s269_s15, 128  }
  0x54   : > { %791 = vsyncadd (%p1094_p6), %s269_s15, 4294967168  ;;  %p316_p13 = scmp.lt.s32.totalorder %s867_s22, 1  ;;  %v814_v0 = vmov 0   ;;  %v329_v4 = vld [vmem:[%s263_s8] sm:$0xff]  ;;  %vm398_vm0 = vcmask 523264   ;;  %v395_v7 = vld [vmem:[%s272_s17] sm:$0xff]  ;;  %v346_v23 = vlaneseq }
  0x55   : > { %662 = vset.pattern.permute.xlu1 %v814_v0  ;;  %663 = vset.pattern.permute.xlu0 %v814_v0  ;;  %v397_v8 = vmul.f32 %v395_v7, %v395_v7  ;;  %vm356_vm2 = vcmask 7168   ;;  %s601_s17 = sshll.u32 %s867_s22, 7  ;;  %p1095_p7 = scmp.ne.s32.totalorder %s1087_s30, 0 }
  0x56   : > { %s317_s10 = scalar_select %p316_p13, %s867_s22, 1  ;;  %v1022_v24 = vand.u32 127, %v346_v23 }
  0x57   : > { %v399_v9 = vsel %vm398_vm0, %v397_v8, 0.0  ;;  %s1033_s7 = scalar_lea.hbm %s1082_s5, %s601_s17  ;;  %s444_s22 = scalar_lea.sflag [#allocation4], %s994_s14 }
  0x58   : > { %s597_s13 = sshll.u32 %s317_s10, 3  ;;  %vm435_vm3 = vcmp.eq.s32.totalorder %v1022_v24, 2  ;;  %vm434_vm4 = vcmp.eq.s32.totalorder %v1022_v24, 1  ;;  %vm433_vm5 = vcmp.eq.s32.totalorder %v1022_v24, 0  ;;  %s815_s9 = smov [#allocation7]  }
  0x59   : > { %s323_s26 = scalar_lea.vmem %s1078_s1, %s597_s13  ;;  %s319_s28 = scalar_lea.vmem %s1077_s0, %s597_s13 }
  0x5a   : > { %s327_s29 = scalar_lea.vmem %s1081_s4, %s597_s13  ;;  %v328_v1 = vld [vmem:[%s323_s26] sm:$0xff]  ;;  %s315_s13 = scalar_lea.vmem [#allocation7], %s997_s16 }
  0x5b   : > { %v330_v2 = vld [vmem:[%s319_s28] sm:$0xff]  ;;  %331 = vmax.xlane.f32.xlu0 %v328_v1  ;;  %s457_s12 = sshll.u32 %s315_s13, 4  ;;  %s744_s28 = sshll.u32 %s815_s9, 4  ;;  %s1035_s12 = int_to_ptr.vmem [resolvable:$true] %s457_s12  ;;  %s745_s28 = int_to_ptr.vmem [resolvable:$false] %s744_s28 }
  0x5c   : > { %349 = vperm.xlu1 %662, %v330_v2   ;;  %v396_v3 = vld [vmem:[%s327_s29] sm:$0xff]  ;;  %s740_s16 = scalar_lea.vmem %s1035_s12, 128  ;;  %s746_s11 = scalar_lea.vmem %s745_s28, 256 }
  0x5d   : > { %v402_v5 = vmul.f32 %v396_v3, %v396_v3  ;;  %v406_v10 = vmul.f32 %v396_v3, %v395_v7  ;;  %p741_p3 = scmp.ne.s32.totalorder %s1035_s12, %s740_s16  ;;  %p747_p9 = scmp.lt.s32.totalorder %s1035_s12, %s745_s28 }
  0x5e   : > { %p748_p0 = scmp.lt.s32.totalorder %s746_s11, %s740_s16 }
  0x5f   : > { %367 = vmax.xlane.f32.xlu0 %v329_v4  ;;  %v403_v6 = vsel %vm398_vm0, %v402_v5, 0.0  ;;  %v407_v11 = vsel %vm398_vm0, %v406_v10, 0.0  ;;  %p742_p5 = pnand %p741_p3, %p1095_p7 }
  0x60   : > { %p749_p1 = por %p748_p0, %p747_p9 }
  0x61   : > { %p743_p8 = pneg %p742_p5 }
  0x63   : > { %404 = vadd.xlane.f32.xlu0 %v403_v6  ;;  %p750_p11 = pnand %p749_p1, %p743_p8 }
  0x80   : > { %400 = vadd.xlane.f32.xlu1 %v399_v9 }
  0xdb   : > { %v350_v26 = vpop.permute.xlu1 %349 }
  0xdc   : > { %vm351_vm1 = vcmp.eq.s32.totalorder %v1022_v24, %v350_v26 }
  0xe8   : > { %v332_v12 = vpop.xlane.xlu0 %331 }
  0xe9   : > { %v333_v13 = vsub.f32 %v328_v1, %v332_v12 }
  0xeb   : > { %v334_v14 = vmul.f32 0.5, %v333_v13  ;;  %v352_v28 = vsel %vm351_vm1, %v333_v13, 0.0 }
  0xec   : > { %v368_v15 = vpop.xlane.xlu0 %367 }
  0xed   : > { %v335_v16 = vmul.f32 1.442695, %v334_v14  ;;  %v369_v17 = vsub.f32 %v329_v4, %v368_v15 }
  0xef   : > { %664 = vpow2.f32 %v335_v16  ;;  %v370_v18 = vmul.f32 0.5, %v369_v17 }
  0xf0   : > { %v405_v29 = vpop.xlane.xlu0 %404 }
  0xf1   : > { %v371_v19 = vmul.f32 1.442695, %v370_v18  ;;  %v378_v25 = vsub.f32 %v370_v18, %v334_v14  ;;  %v412_v31 = vmax.f32 %v405_v29, 1e-24 }
  0xf3   : > { %666 = vpow2.f32 %v371_v19 }
  0xf4   : > { %668 = vrsqrt.f32 %v412_v31 }
  0xf9   : > { %v665_v20 = vpop.eup %664 }
  0xfa   : > { %342 = vadd.xlane.f32.xlu0 %v665_v20  ;;  %v337_v22 = vmul.f32 %v665_v20, %v665_v20 }
  0xfd   : > { %v667_v21 = vpop.eup %666 }
  0xfe   : > { %373 = vadd.xlane.f32.xlu0 %v667_v21  ;;  %v379_v27 = vmul.f32 %v667_v21, %v378_v25  ;;  %v669_v34 = vpop.eup %668 }
  0xff   : > { %v416_v38 = vmul.f32 %v669_v34, %v669_v34 }
 0x101   : > { %v417_v41 = vmul.f32 %v416_v38, %v405_v29 }
 0x102   : > { %338 = vadd.xlane.f32.xlu0 %v337_v22 }
 0x106   : > { %408 = vadd.xlane.f32.xlu0 %v407_v11 }
 0x10a   : > { %380 = vadd.xlane.f32.xlu0 %v379_v27 }
 0x10d   : > { %v401_v30 = vpop.xlane.xlu1 %400 }
 0x10e   : > { %353 = vadd.xlane.f32.xlu0 %v352_v28  ;;  %v410_v32 = vmax.f32 %v401_v30, 1e-24 }
 0x110   : > { %670 = vrsqrt.f32 %v410_v32 }
 0x11a   : > { %v671_v35 = vpop.eup %670 }
 0x11b   : > { %v414_v37 = vmul.f32 %v671_v35, %v671_v35  ;;  %v420_v43 = vmul.f32 %v671_v35, %v669_v34 }
 0x11d   : > { %v415_v40 = vmul.f32 %v414_v37, %v401_v30 }
 0x11f   : > { %v418_v47 = vadd.f32 %v417_v41, %v415_v40 }
 0x187   : > { %v343_v33 = vpop.xlane.xlu0 %342 }
 0x188   : > { %672 = vlog2.f32 %v343_v33 }
 0x18b   : > { %v374_v36 = vpop.xlane.xlu0 %373 }
 0x18c   : > { %674 = vlog2.f32 %v374_v36 }
 0x18d   : > { %676 = vrcp.f32 %v374_v36 }
 0x18f   : > { %v339_v39 = vpop.xlane.xlu0 %338 }
 0x190   : > { %678 = vlog2.f32 %v339_v39 }
 0x192   : > { %v673_v45 = vpop.eup %672 }
 0x193   : > { %v409_v42 = vpop.xlane.xlu0 %408  ;;  %v345_v53 = vmul.f32 0.6931472, %v673_v45 }
 0x194   : > { %v419_v44 = vmul.f32 2.0, %v409_v42 }
 0x196   : > { %v675_v46 = vpop.eup %674  ;;  %v421_v48 = vmul.f32 %v420_v43, %v419_v44 }
 0x197   : > { %v376_v49 = vmul.f32 0.6931472, %v675_v46  ;;  %v381_v50 = vpop.xlane.xlu0 %380  ;;  %v677_v51 = vpop.eup %676 }
 0x198   : > { %v422_v52 = vsub.f32 %v418_v47, %v421_v48  ;;  %v382_v56 = vmul.f32 %v677_v51, %v381_v50 }
 0x199   : > { %v383_v59 = vsub.f32 %v345_v53, %v376_v49 }
 0x19a   : > { %v679_v54 = vpop.eup %678  ;;  %v423_v55 = vsel %vm356_vm2, %v422_v52, 0.0 }
 0x19b   : > { %424 = vadd.xlane.f32.xlu1 %v423_v55  ;;  %v341_v57 = vmul.f32 0.6931472, %v679_v54  ;;  %v354_v58 = vpop.xlane.xlu0 %353  ;;  %v384_v62 = vadd.f32 %v383_v59, %v382_v56 }
 0x19d   : > { %v355_v60 = vsub.f32 %v341_v57, %v354_v58  ;;  %v385_v63 = vsel %vm356_vm2, %v384_v62, 0.0 }
 0x19f   : > { %v357_v61 = vsel %vm356_vm2, %v355_v60, 0.0 }
 0x1a0   : > { %358 = vadd.xlane.f32.xlu0 %v357_v61 }
 0x1a4   : > { %386 = vadd.xlane.f32.xlu0 %v385_v63 }
 0x228   : > { %v425_v0 = vpop.xlane.xlu1 %424 }
 0x229   : > { %v426_v1 = vrot.slane %v425_v0, 4 }
 0x22b   : > { %v427_v2 = vadd.f32 %v426_v1, %v425_v0 }
 0x22d   : > { %v359_v3 = vpop.xlane.xlu0 %358  ;;  %v428_v6 = vrot.slane %v427_v2, 2 }
 0x22e   : > { %v360_v4 = vrot.slane %v359_v3, 4 }
 0x22f   : > { %v429_v12 = vadd.f32 %v428_v6, %v427_v2 }
 0x230   : > { %v361_v5 = vadd.f32 %v360_v4, %v359_v3 }
 0x231   : > { %v387_v7 = vpop.xlane.xlu0 %386  ;;  %v430_v17 = vrot.slane %v429_v12, 1 }
 0x232   : > { %v362_v8 = vrot.slane %v361_v5, 2  ;;  %v388_v9 = vrot.slane %v387_v7, 4 }
 0x233   : > { %v431_v20 = vadd.f32 %v430_v17, %v429_v12 }
 0x234   : > { %v389_v10 = vadd.f32 %v388_v9, %v387_v7  ;;  %v363_v11 = vadd.f32 %v362_v8, %v361_v5 }
 0x236   : > { %v390_v13 = vrot.slane %v389_v10, 2  ;;  %v364_v14 = vrot.slane %v363_v11, 1 }
 0x238   : > { %v391_v15 = vadd.f32 %v390_v13, %v389_v10  ;;  %v365_v16 = vadd.f32 %v364_v14, %v363_v11 }
 0x23a   : > { %604 = vpush %v365_v16  ;;  %v392_v18 = vrot.slane %v391_v15, 1 }
 0x23c   : > { %v393_v19 = vadd.f32 %v392_v18, %v391_v15 }
 0x23e   : > { %606 = vpush %v393_v19 }
 0x23f   : > { %608 = vpush %v431_v20 }
 0x26b   : > { %s605_s8 = spop %604 }
 0x26c   : > { %v440_v25 = vstv %s605_s8 }
 0x26f   : > { %s607_s15 = spop %606 }
 0x270   : > { %v438_v21 = vstv %s607_s15  ;;  %s609_s10 = spop %608 }
 0x271   : > { %v436_v22 = vstv %s609_s10 }
 0x272   : > { %v437_v23 = vsel %vm435_vm3, %v436_v22, 0.0 }
 0x273   : > { %v439_v26 = vsel %vm434_vm4, %v438_v21, %v437_v23 }
 0x274   : > { %v441_v27 = vsel %vm433_vm5, %v440_v25, %v439_v26 }
 0x275   : > { %442 = vst [vmem:[%s315_s13] sm:$0xff] %v441_v27 }
 0x276   : > { %753 = shalt.err (!%p750_p11)
}
 0x277   : > { %s754_s14 = scalar_lea.hbm %s1033_s7, 128  ;;  %s758_s8 = scalar_lea.hbm %s1082_s5, 256 }
 0x278   : > { %p755_p12 = scmp.ne.s32.totalorder %s1033_s7, %s754_s14  ;;  %p759_p10 = scmp.lt.u32.totalorder %s1033_s7, %s1082_s5 }
 0x279   : > { %p760_p6 = scmp.lt.u32.totalorder %s758_s8, %s754_s14  ;;  %p762_p3 = scmp.lt.u32.totalorder %s754_s14, %s1033_s7 }
 0x27a   : > { %p756_p2 = pnand %p755_p12, %p1095_p7 }
 0x27b   : > { %p761_p13 = por %p760_p6, %p759_p10 }
 0x27c   : > { %p757_p4 = pneg %p756_p2 }
 0x27d   : > { %p763_p5 = por %p762_p3, %p761_p13 }
 0x27f   : > { %p764_p8 = pnand %p763_p5, %p757_p4 }
 0x281   : > { %767 = shalt.err (!%p764_p8)
}
 0x282   : > { %614 = dma.vmem_to_hbm [thread:$0]  (%p1095_p7), %s1035_s12, 128, %s1033_s7, %s444_s22  }
 0x283 PF: > { %s469_s10 = sand.u32 1, %s798_s18   ;;  %p1096_p9 = scmp.ne.s32.totalorder %s1088_s6, 0 }
 0x284   : > { %p1097_p0 = scmp.ge.s32.totalorder %s810_s21, 2  ;;  %s470_s13 = scalar_lea.sflag [#allocation4], %s469_s10 }
 0x286   : > { %p624_p1 = pnand %p1097_p0, %p1096_p9 }
 0x288   : > { %793 = dma.done.wait (!%p624_p1), %s470_s13, 128  }
 0x289   : > { %795 = vsyncadd (!%p624_p1), %s470_s13, 4294967168  ;;  %p21_p11 = scmp.ge.s32.totalorder %s871_s24, 4   ;;  %s1098_s18 = smov %s802_s19 }
 0x28a   : > { %s1099_s19 = smov %s806_s20  ;;  %s1100_s20 = smov %s883_s27 }
 0x28b   : > { %s1101_s21 = smov %s871_s24  ;;  %23 = sbr.rel (!%p21_p11) target bundleno = 7 (0x7), region = 107 }
 0x292   :  { %475 = vsyncpa [#allocation3], 1 }
 0x293   :  { %477 = vsyncpa [#allocation3 + $0x1], 1 }
 0x294   :  { %478 = vsyncpa [#allocation6], 1 }
 0x295   :  { %480 = vsyncpa [#allocation6 + $0x1], 1 }
 0x296   :  { %481 = vsyncpa [#allocation4], 1 }
 0x297   :  { %483 = vsyncpa [#allocation4 + $0x1], 1 }

</bundles_post_ra>
